<compile_context>
chip_gen: v6e
topology: v6e:2x2x1
jax: 0.10.0
libtpu: 0.0.40
codegen_flags: <defaults>
</compile_context>

<pallas_src>
import functools

import jax
import jax.numpy as jnp
from jax import lax
from jax.experimental import pallas as pl
from jax.experimental.pallas import tpu as pltpu

LEAKY_SLOPE = 0.01  # pytorch_toolbelt ABN default: leaky_relu(slope=0.01)
BN_EPS = 1e-5


def _leaky_relu(x):
    return jnp.where(x >= 0, x, LEAKY_SLOPE * x)


def _round_up(x, m):
    return ((x + m - 1) // m) * m


def _pad_to(a, shape):
    return jnp.pad(a, [(0, s - d) for d, s in zip(a.shape, shape)])


def _vmem_budget_bytes():
    """Generation-aware scoped-VMEM budget: 0.8 * physical capacity.

    ~102 MiB on 128 MiB parts (v5e/v6e), ~51 MiB on v7x (headroom for Mosaic
    internal scratch / semaphores / double buffers)."""
    try:
        cap = int(pltpu.get_tpu_info().vmem_capacity_bytes)
    except Exception:
        cap = 64 * 1024 * 1024  # conservative (v7x-sized) default
    return max(32 * 1024 * 1024, int(cap * 0.8))


def _has_bf16_eup():
    """bf16 EUP/VPU exp path exists on v6e and newer; v5e and older keep f32 exp."""
    try:
        kind = jax.devices()[0].device_kind.lower()
    except Exception:
        return False
    if not ("tpu" in kind or "v6" in kind or "v7" in kind):
        return False
    return not any(t in kind for t in ("v2", "v3", "v4", "v5"))


# ----------------------------------------------------------------------------
# Pass 1: fused per-pixel projections (f_key == f_query, f_value).
#   x block is channel-major (1, Cinp, T); contraction over channels (dim 0)
#   feeds the MXU directly (transposed-LHS matmul), result is spatial-major.
# ----------------------------------------------------------------------------
def proj_kernel(x_ref, wkv_ref, bias_ref, kq_ref, val_ref, *, ck_pad):
    x_cm = x_ref[0]                                                     # (Cinp, T) bf16
    # single fused MXU pass: [wk*kscale*Ck^-0.25 | wv] with f32 accumulation
    kqv = lax.dot_general(x_cm, wkv_ref[...],
                          dimension_numbers=(((0,), (0,)), ((), ())),
                          preferred_element_type=jnp.float32)           # (T, Ckp+Cvp)
    kqv = kqv + bias_ref[...]
    # f_key/f_query: leaky_relu (BN scale + Ck^-0.25 already folded into the weight)
    kq_ref[0] = _leaky_relu(kqv[:, :ck_pad]).astype(jnp.bfloat16)
    # f_value: bias already folded into bias_ref
    val_ref[0] = kqv[:, ck_pad:].astype(jnp.bfloat16)


# ----------------------------------------------------------------------------
# Pass 2: flash-style self-attention + folded (W conv + conv_bn_dropout) epilogue.
# ----------------------------------------------------------------------------
def attn_kernel(q_ref, k_ref, v_ref, kbias_ref, w_ref, b_ref, o_ref,
                m_ref, l_ref, acc_ref, *, need_mask, bf16_exp):
    kv = pl.program_id(2)

    @pl.when(kv == 0)
    def _():
        m_ref[...] = jnp.full_like(m_ref, -1e30)
        l_ref[...] = jnp.zeros_like(l_ref)
        acc_ref[...] = jnp.zeros_like(acc_ref)

    q = q_ref[0]   # (TQ, Ckp) bf16, already carries Ck**-0.25
    k = k_ref[0]   # (TK, Ckp) bf16
    v = v_ref[0]   # (TK, Cvp) bf16

    # sim tile = q @ k^T, contracting the last dims directly (no transposed copy).
    s = lax.dot_general(q, k, dimension_numbers=(((1,), (1,)), ((), ())),
                        preferred_element_type=jnp.float32)             # (TQ, TK) f32

    if need_mask:  # static: additive key-padding bias (0 / -1e30), one VPU add
        s = s + kbias_ref[...]

    m_prev = m_ref[...]
    m_new = jnp.maximum(m_prev, jnp.max(s, axis=-1, keepdims=True))
    alpha = jnp.exp(m_prev - m_new)
    if bf16_exp:
        # v6e/v7x: bf16 EUP exp (p is consumed by the MXU in bf16 anyway)
        p = jnp.exp((s - m_new).astype(jnp.bfloat16))
        p_sum = jnp.sum(p.astype(jnp.float32), axis=-1, keepdims=True)
    else:
        # v5e and older: no bf16 EUP path, keep f32 exp
        p_f32 = jnp.exp(s - m_new)
        p_sum = jnp.sum(p_f32, axis=-1, keepdims=True)
        p = p_f32.astype(jnp.bfloat16)
    l_ref[...] = alpha * l_ref[...] + p_sum
    acc_ref[...] = alpha * acc_ref[...] + jnp.dot(
        p, v, preferred_element_type=jnp.float32)
    m_ref[...] = m_new

    @pl.when(kv == pl.num_programs(2) - 1)
    def _():
        # normalize once per output row (EUP reciprocal), then the single folded
        # output conv (W + conv_bn_dropout pre-multiplied in the wrapper)
        ctx = acc_ref[...] * pl.reciprocal(l_ref[...], approx=True)      # (TQ, Cvp)
        out = jnp.dot(ctx.astype(jnp.bfloat16), w_ref[...],
                      preferred_element_type=jnp.float32) + b_ref[...]   # (TQ, Coutp)
        out = _leaky_relu(out)
        # channel-major store (XLU tile transpose) -> no wrapper output transpose
        o_ref[0] = out.T.astype(o_ref.dtype)


# ----------------------------------------------------------------------------
# Wrapper
# ----------------------------------------------------------------------------
def object_context_block(x_nchw, params, *, tq_max=None, tk_max=None):
    """x_nchw: (B, Cin, H, W) float32 -> (B, Cout, H, W) float32."""
    B, Cin, H, W = x_nchw.shape
    (wk, kscale, kshift, wv, bv, ww, bw, wf, fscale, fshift) = params
    Ck = wk.shape[1]
    Cv = wv.shape[1]
    Cout = wf.shape[1]
    L = H * W

    budget = _vmem_budget_bytes()
    bf16_exp = _has_bf16_eup()

    # ---- tiling: decoupled query / key tiles, all multiples of 128 ----------
    if tk_max is None:
        tk_max = 256                       # keep >=256 so the v6e/v7x MXU stays full
    if tq_max is None:
        tq_max = 1024 if budget >= 96 * 1024 * 1024 else 512
    base = _round_up(L, 128)
    TK = _round_up(max(128, min(tk_max, base)), 128)
    L_pad = _round_up(L, TK)               # padding < TK: every kv tile has valid keys
    n_kv = L_pad // TK
    k_mult = max(1, min(max(1, tq_max // TK), n_kv))
    while n_kv % k_mult:                   # TQ must divide L_pad
        k_mult -= 1
    TQ = TK * k_mult
    nQ = L_pad // TQ
    need_mask = (L_pad != L)
    # NOTE(v7x): for batch-1 / single-q-tile shapes B*nQ may be 1; the kernel is
    # then serialized on one TensorCore.

    # Channel (lane) dims padded to multiples of 128 -> lane-dense blocks.
    Cinp = _round_up(Cin, 128)
    Ckp = _round_up(Ck, 128)
    Cvp = _round_up(Cv, 128)
    Coutp = _round_up(Cout, 128)
    CKVp = Ckp + Cvp

    # ---- algebraic folds (done once in the wrapper, in f32) -----------------
    inv_scale = float(Ck) ** -0.25
    wk_f = wk * kscale * inv_scale                      # fold BN scale + Ck^-0.25
    kshift_f = kshift * inv_scale                       # (leaky is +homogeneous)
    wkv = jnp.concatenate([_pad_to(wk_f, (Cinp, Ckp)),
                           _pad_to(wv, (Cinp, Cvp))], axis=1).astype(jnp.bfloat16)
    bias_kv = jnp.concatenate([_pad_to(kshift_f, (1, Ckp)),
                               _pad_to(bv, (1, Cvp))], axis=1)           # f32

    wf_s = wf * fscale                                   # fold conv_bn_dropout BN scale
    w_out = _pad_to(ww @ wf_s, (Cvp, Coutp)).astype(jnp.bfloat16)   # W ∘ conv_bn folded
    b_out = _pad_to(bw @ wf_s + fshift, (1, Coutp))                 # folded bias, f32

    # additive key-padding bias (0 for valid columns, -1e30 for padded ones)
    kbias = jnp.where(jnp.arange(L_pad) < L, 0.0, -1e30).astype(jnp.float32)[None, :]

    # x stays channel-major (NCHW flattened); bf16 cast fused into the pad copy.
    x_cm = _pad_to(x_nchw.reshape(B, Cin, L).astype(jnp.bfloat16), (B, Cinp, L_pad))

    def _limit(est_bytes):
        return int(min(budget, max(32 * 1024 * 1024, 2 * est_bytes)))

    # ---- pass 1: projections -------------------------------------------------
    est_p = (2 * Cinp * TQ * 2 + 2 * Cinp * CKVp * 2 + 2 * CKVp * 4
             + 2 * TQ * (Ckp + Cvp) * 2 + TQ * CKVp * 4)
    kq, value = pl.pallas_call(
        functools.partial(proj_kernel, ck_pad=Ckp),
        out_shape=(jax.ShapeDtypeStruct((B, L_pad, Ckp), jnp.bfloat16),
                   jax.ShapeDtypeStruct((B, L_pad, Cvp), jnp.bfloat16)),
        grid=(B, L_pad // TQ),
        in_specs=[
            pl.BlockSpec((1, Cinp, TQ), lambda b, i: (b, 0, i)),   # x (channel-major)
            pl.BlockSpec((Cinp, CKVp), lambda b, i: (0, 0)),       # fused [wk|wv]
            pl.BlockSpec((1, CKVp), lambda b, i: (0, 0)),          # fused bias
        ],
        out_specs=(pl.BlockSpec((1, TQ, Ckp), lambda b, i: (b, i, 0)),
                   pl.BlockSpec((1, TQ, Cvp), lambda b, i: (b, i, 0))),
        compiler_params=pltpu.CompilerParams(
            dimension_semantics=("parallel", "parallel"),
            vmem_limit_bytes=_limit(est_p)),
    )(x_cm, wkv, bias_kv)

    # ---- pass 2: flash attention + folded output conv ------------------------
    est_a = (2 * TQ * Ckp * 2 + 2 * TK * (Ckp + Cvp) * 2 + 2 * TK * 4
             + 2 * Cvp * Coutp * 2 + 2 * Coutp * 4
             + 2 * Coutp * TQ * 4
             + TQ * Cvp * 4 + 2 * TQ * 4
             + 2 * TQ * TK * 4 + 2 * TQ * Coutp * 4)
    out_cm = pl.pallas_call(
        functools.partial(attn_kernel, need_mask=need_mask, bf16_exp=bf16_exp),
        out_shape=jax.ShapeDtypeStruct((B, Coutp, L_pad), jnp.float32),
        grid=(B, nQ, n_kv),
        in_specs=[
            pl.BlockSpec((1, TQ, Ckp), lambda b, q, k: (b, q, 0)),   # query tile
            pl.BlockSpec((1, TK, Ckp), lambda b, q, k: (b, k, 0)),   # key tile
            pl.BlockSpec((1, TK, Cvp), lambda b, q, k: (b, k, 0)),   # value tile
            pl.BlockSpec((1, TK), lambda b, q, k: (0, k)),           # key-padding bias
            pl.BlockSpec((Cvp, Coutp), lambda b, q, k: (0, 0)),      # folded W weight
            pl.BlockSpec((1, Coutp), lambda b, q, k: (0, 0)),        # folded bias
        ],
        out_specs=pl.BlockSpec((1, Coutp, TQ), lambda b, q, k: (b, 0, q)),
        scratch_shapes=[
            pltpu.VMEM((TQ, 1), jnp.float32),      # running max
            pltpu.VMEM((TQ, 1), jnp.float32),      # running sum
            pltpu.VMEM((TQ, Cvp), jnp.float32),    # context accumulator
        ],
        compiler_params=pltpu.CompilerParams(
            dimension_semantics=("parallel", "parallel", "arbitrary"),
            vmem_limit_bytes=_limit(est_a)),
    )(kq, kq, value, kbias, w_out, b_out)

    # Output is already channel-major: slice + reshape only (no transpose).
    # TODO(synk): emit bf16 here if the consumer tolerates it (halves writeback).
    return out_cm[:, :Cout, :L].reshape(B, Cout, H, W)


# ----------------------------------------------------------------------------
# Parameters & pure-JAX reference
# ----------------------------------------------------------------------------
def make_params(key, in_channels, out_channels, key_channels, value_channels):
    """Deterministic synthetic parameters. 1x1 conv weights stored as (Cin, Cout)."""
    ks = jax.random.split(key, 12)

    def fold_bn(gamma, beta, mean, var, bias=None):
        s = gamma / jnp.sqrt(var + BN_EPS)
        t = beta - mean * s
        if bias is not None:
            t = t + bias * s
        return s[None, :], t[None, :]

    # f_key (== f_query): Conv2d(Cin->Ck) + ABN(Ck)
    wk = jax.random.normal(ks[0], (in_channels, key_channels), jnp.float32) * 0.1
    bk = jax.random.normal(ks[1], (key_channels,), jnp.float32) * 0.1
    k_gamma = 1.0 + 0.1 * jax.random.normal(ks[2], (key_channels,), jnp.float32)
    k_beta = 0.1 * jax.random.normal(ks[3], (key_channels,), jnp.float32)
    k_mean = 0.05 * jax.random.normal(ks[4], (key_channels,), jnp.float32)
    k_var = jnp.abs(jax.random.normal(ks[5], (key_channels,), jnp.float32)) + 0.5
    kscale, kshift = fold_bn(k_gamma, k_beta, k_mean, k_var, bk)

    # f_value: Conv2d(Cin->Cv) with bias
    wv = jax.random.normal(ks[6], (in_channels, value_channels), jnp.float32) * 0.1
    bv = (jax.random.normal(ks[7], (value_channels,), jnp.float32) * 0.1)[None, :]

    # W: Conv2d(Cv->Cout), bias initialized to 0 (as in the module)
    ww = jax.random.normal(ks[8], (value_channels, out_channels), jnp.float32) * 0.1
    bw = jnp.zeros((1, out_channels), jnp.float32)

    # conv_bn_dropout: Conv2d(Cin->Cout, bias=False) + ABN(Cout)
    wf = jax.random.normal(ks[9], (out_channels, out_channels), jnp.float32) * 0.1
    f_gamma = 1.0 + 0.1 * jax.random.normal(ks[10], (out_channels,), jnp.float32)
    f_beta = 0.1 * jax.random.normal(ks[11], (out_channels,), jnp.float32)
    f_mean = jnp.zeros((out_channels,), jnp.float32)
    f_var = jnp.ones((out_channels,), jnp.float32)
    fscale, fshift = fold_bn(f_gamma, f_beta, f_mean, f_var, None)

    return (wk, kscale, kshift, wv, bv, ww, bw, wf, fscale, fshift)


def reference_forward(x_nchw, params):
    """Pure-JAX f32 reference matching the PyTorch forward (sizes=[1], inference ABN)."""
    (wk, kscale, kshift, wv, bv, ww, bw, wf, fscale, fshift) = params
    B, Cin, H, W = x_nchw.shape
    L = H * W
    Ck = wk.shape[1]
    x = jnp.transpose(x_nchw, (0, 2, 3, 1)).reshape(B, L, Cin)
    kq = _leaky_relu(jnp.einsum("blc,ck->blk", x, wk) * kscale + kshift)
    value = jnp.einsum("blc,cv->blv", x, wv) + bv
    sim = jnp.einsum("bqk,bpk->bqp", kq, kq) * (Ck ** -0.5)
    sim = jax.nn.softmax(sim, axis=-1)
    context = jnp.einsum("bqp,bpv->bqv", sim, value)
    ctx = jnp.einsum("blv,vo->blo", context, ww) + bw
    out = _leaky_relu(jnp.einsum("blo,op->blp", ctx, wf) * fscale + fshift)
    Cout = wf.shape[1]
    return jnp.transpose(out.reshape(B, H, W, Cout), (0, 3, 1, 2))


if __name__ == "__main__":
    key = jax.random.PRNGKey(0)
    kx1, kx2, kp = jax.random.split(key, 3)

    B, Cin, H, W = 2, 8, 16, 16
    Cout, Ck, Cv = 8, 4, 4  # module requires in_channels == out_channels
    params = make_params(kp, Cin, Cout, Ck, Cv)

    x1 = jax.random.normal(kx1, (B, Cin, H, W), jnp.float32)
    ref1 = reference_forward(x1, params)

    # Case 1a: multi-tile flash path (L=256 -> 2 query tiles x 2 key tiles)
    out1a = jax.block_until_ready(object_context_block(x1, params, tq_max=128, tk_max=128))
    assert out1a.shape == (B, Cout, H, W)
    assert jnp.allclose(out1a, ref1, atol=3e-2, rtol=3e-2), (
        "case1a mismatch, max abs err %e" % float(jnp.max(jnp.abs(out1a - ref1))))

    # Case 1b: decoupled TQ != TK (1 query tile x 2 key tiles)
    out1b = jax.block_until_ready(object_context_block(x1, params, tq_max=256, tk_max=128))
    assert jnp.allclose(out1b, ref1, atol=3e-2, rtol=3e-2), (
        "case1b mismatch, max abs err %e" % float(jnp.max(jnp.abs(out1b - ref1))))

    # Case 1c: auto (generation-aware) tiling
    out1c = jax.block_until_ready(object_context_block(x1, params))
    assert jnp.allclose(out1c, ref1, atol=3e-2, rtol=3e-2), (
        "case1c mismatch, max abs err %e" % float(jnp.max(jnp.abs(out1c - ref1))))

    # Case 2: ragged spatial size (L=81 padded to 128) exercises the key-mask path
    x2 = jax.random.normal(kx2, (1, Cin, 9, 9), jnp.float32)
    out2 = jax.block_until_ready(object_context_block(x2, params))
    ref2 = reference_forward(x2, params)
    assert out2.shape == (1, Cout, 9, 9)
    assert jnp.allclose(out2, ref2, atol=3e-2, rtol=3e-2), (
        "case2 mismatch, max abs err %e" % float(jnp.max(jnp.abs(out2 - ref2))))

    print("KERNEL_OK")
</pallas_src>

<mosaic_0001>
module attributes {stable_mosaic.version = 11 : i64} {
  func.func @proj_kernel(%arg0: i32, %arg1: i32, %arg2: memref<1x128x128xbf16, #tpu.memory_space<vmem>>, %arg3: memref<128x256xbf16, #tpu.memory_space<vmem>>, %arg4: memref<1x256xf32, #tpu.memory_space<vmem>>, %arg5: memref<1x128x128xbf16, #tpu.memory_space<vmem>>, %arg6: memref<1x128x128xbf16, #tpu.memory_space<vmem>>) attributes {dimension_semantics = [#tpu.dimension_semantics<parallel>, #tpu.dimension_semantics<parallel>], iteration_bounds = array<i64: 2, 2>, scalar_prefetch = 0 : i64, scratch_operands = 0 : i64, tpu.core_type = #tpu.core_type<tc>, window_params = [{transform_indices = @transform_0, window_bounds = array<i64: 1, 128, 128>}, {pipeline_mode = #tpu.pipeline_mode<synchronous>, transform_indices = @transform_1, window_bounds = array<i64: 128, 256>}, {pipeline_mode = #tpu.pipeline_mode<synchronous>, transform_indices = @transform_2, window_bounds = array<i64: 1, 256>}, {transform_indices = @transform_3, window_bounds = array<i64: 1, 128, 128>}, {transform_indices = @transform_4, window_bounds = array<i64: 1, 128, 128>}]} {
    %c0 = arith.constant 0 : index
    %c0_0 = arith.constant 0 : index
    %c0_1 = arith.constant 0 : index
    %0 = vector.load %arg2[%c0, %c0_0, %c0_1] : memref<1x128x128xbf16, #tpu.memory_space<vmem>>, vector<1x128x128xbf16>
    %1 = vector.shape_cast %0 : vector<1x128x128xbf16> to vector<128x128xbf16>
    %c0_2 = arith.constant 0 : index
    %c0_3 = arith.constant 0 : index
    %2 = vector.load %arg3[%c0_2, %c0_3] : memref<128x256xbf16, #tpu.memory_space<vmem>>, vector<128x256xbf16>
    %cst = arith.constant dense<0.000000e+00> : vector<128x256xf32>
    %3 = tpu.matmul %1, %2, %cst {dimension_numbers = #tpu.dot_dimension_numbers<[0], [0], [1], [1], [0, 1, 1, 1], [], []>} : vector<128x128xbf16>, vector<128x256xbf16>, vector<128x256xf32> -> vector<128x256xf32>
    %c0_4 = arith.constant 0 : index
    %c0_5 = arith.constant 0 : index
    %4 = vector.load %arg4[%c0_4, %c0_5] : memref<1x256xf32, #tpu.memory_space<vmem>>, vector<1x256xf32>
    %5 = vector.broadcast %4 : vector<1x256xf32> to vector<128x256xf32>
    %6 = arith.addf %3, %5 : vector<128x256xf32>
    %7 = vector.extract_strided_slice %6 {offsets = [0, 0], sizes = [128, 128], strides = [1, 1]} : vector<128x256xf32> to vector<128x128xf32>
    %cst_6 = arith.constant 0.000000e+00 : f32
    %8 = vector.broadcast %cst_6 : f32 to vector<128x128xf32>
    %9 = arith.cmpf oge, %7, %8 : vector<128x128xf32>
    %cst_7 = arith.constant 0.00999999977 : f32
    %10 = vector.broadcast %cst_7 : f32 to vector<128x128xf32>
    %11 = arith.mulf %10, %7 : vector<128x128xf32>
    %12 = arith.select %9, %7, %11 : vector<128x128xi1>, vector<128x128xf32>
    %13 = arith.truncf %12 : vector<128x128xf32> to vector<128x128xbf16>
    %c0_8 = arith.constant 0 : index
    %c0_9 = arith.constant 0 : index
    %c0_10 = arith.constant 0 : index
    %14 = vector.load %arg5[%c0_8, %c0_9, %c0_10] : memref<1x128x128xbf16, #tpu.memory_space<vmem>>, vector<1x128x128xbf16>
    %15 = vector.shape_cast %14 : vector<1x128x128xbf16> to vector<128x128xbf16>
    %16 = vector.shape_cast %13 : vector<128x128xbf16> to vector<1x128x128xbf16>
    tpu.vector_store %arg5[%c0_8, %c0_9, %c0_10], %16 {strides = array<i32>} : memref<1x128x128xbf16, #tpu.memory_space<vmem>>, vector<1x128x128xbf16>,
    %17 = vector.extract_strided_slice %6 {offsets = [0, 128], sizes = [128, 128], strides = [1, 1]} : vector<128x256xf32> to vector<128x128xf32>
    %18 = arith.truncf %17 : vector<128x128xf32> to vector<128x128xbf16>
    %c0_11 = arith.constant 0 : index
    %c0_12 = arith.constant 0 : index
    %c0_13 = arith.constant 0 : index
    %19 = vector.load %arg6[%c0_11, %c0_12, %c0_13] : memref<1x128x128xbf16, #tpu.memory_space<vmem>>, vector<1x128x128xbf16>
    %20 = vector.shape_cast %19 : vector<1x128x128xbf16> to vector<128x128xbf16>
    %21 = vector.shape_cast %18 : vector<128x128xbf16> to vector<1x128x128xbf16>
    tpu.vector_store %arg6[%c0_11, %c0_12, %c0_13], %21 {strides = array<i32>} : memref<1x128x128xbf16, #tpu.memory_space<vmem>>, vector<1x128x128xbf16>,
    return
  }
  func.func @transform_0(%arg0: i32, %arg1: i32) -> (i32, i32, i32) {
    %c0_i32 = arith.constant 0 : i32
    %c0_i32_0 = arith.constant 0 : i32
    return %arg0, %c0_i32, %arg1 : i32, i32, i32
  }
  func.func @transform_1(%arg0: i32, %arg1: i32) -> (i32, i32) {
    %c0_i32 = arith.constant 0 : i32
    %c0_i32_0 = arith.constant 0 : i32
    %c0_i32_1 = arith.constant 0 : i32
    return %c0_i32, %c0_i32_0 : i32, i32
  }
  func.func @transform_2(%arg0: i32, %arg1: i32) -> (i32, i32) {
    %c0_i32 = arith.constant 0 : i32
    %c0_i32_0 = arith.constant 0 : i32
    %c0_i32_1 = arith.constant 0 : i32
    return %c0_i32, %c0_i32_0 : i32, i32
  }
  func.func @transform_3(%arg0: i32, %arg1: i32) -> (i32, i32, i32) {
    %c0_i32 = arith.constant 0 : i32
    %c0_i32_0 = arith.constant 0 : i32
    return %arg0, %arg1, %c0_i32 : i32, i32, i32
  }
  func.func @transform_4(%arg0: i32, %arg1: i32) -> (i32, i32, i32) {
    %c0_i32 = arith.constant 0 : i32
    %c0_i32_0 = arith.constant 0 : i32
    return %arg0, %arg1, %c0_i32 : i32, i32, i32
  }
}

</mosaic_0001>

<bundles_post_ra>
// kernel: tpu_custom_call.1
= control target key start
LH: loop header
LB: loop body
LE: loop exit
PB: predicated region body
PF: predicated region fallthrough
CT: control target
= control target key end

     0   :  { %s1842_s0 = inlined_call_operand.hbm [shape: bf16[2,128,256], index: 0, kind: input, shape index: {}]   ;;  %s1843_s1 = inlined_call_operand.hbm [shape: bf16[128,256], index: 1, kind: input, shape index: {}]   ;;  %s1844_s2 = inlined_call_operand.vmem [shape: f32[1,256], index: 2, kind: input, shape index: {}]   ;;  %s1845_s3 = inlined_call_operand.hbm [shape: bf16[2,256,128], index: 3, kind: output, shape index: {0}]   ;;  %s1846_s4 = inlined_call_operand.hbm [shape: bf16[2,256,128], index: 4, kind: output, shape index: {1}]  }
   0x1   :  { %1857 = sst [smem:[#allocation18_spill]] %s1843_s1 }
   0x2   :  { %1858 = sst [smem:[#allocation19_spill]] %s1845_s3 }
   0x3   :  { %10 = vsyncpa [#allocation3], 0 }
   0x4   :  { %12 = vsyncpa [#allocation3 + $0x1], 0 }
   0x5   :  { %13 = vsyncpa [#allocation6], 0 }
   0x6   :  { %14 = vsyncpa [#allocation4], 0 }
   0x7   :  { %16 = vsyncpa [#allocation4 + $0x1], 0 }
   0x8   :  { %17 = vsyncpa [#allocation9], 0 }
   0x9   :  { %19 = vsyncpa [#allocation9 + $0x1], 0  ;;  %s1522_s15 = smov 0   ;;  %s1524_s16 = smov 0  }
   0xa   :  { %s1526_s17 = smov 0   ;;  %s1528_s18 = smov 0  }
   0xb   :  { %s1530_s19 = smov 0   ;;  %s1532_s20 = smov 0  }
   0xc   :  { %s1534_s21 = smov 0   ;;  %s1536_s22 = smov 0  }
   0xd LB: > { %1859 = sst [smem:[#allocation14_spill]] %s1456_s15  ;;  %s946_s23 = sadd.s32 4294967295, %s1484_s22   ;;  %s1484_s22 = sphi %s1536_s22, %s25_s22   ;;  %s1480_s21 = sphi %s1534_s21, %s1890_s21   ;;  %s1476_s20 = sphi %s1532_s20, %s1889_s20   ;;  %s1472_s19 = sphi %s1530_s19, %s1888_s19   ;;  %s1468_s18 = sphi %s1528_s18, %s1887_s18   ;;  %s1464_s17 = sphi %s1526_s17, %s1886_s17   ;;  %s1460_s16 = sphi %s1524_s16, %s1885_s16   ;;  %s1456_s15 = sphi %s1522_s15, %s1884_s15  }
   0xe   : > { %1860 = sst [smem:[#allocation15_spill]] %s1484_s22  ;;  %s947_s24 = sadd.s32 4294967294, %s1484_s22  }
   0xf   : > { %p53_p0 = scmp.ne.s32.totalorder %s1464_s17, %s1460_s16  ;;  %p54_p1 = scmp.eq.s32.totalorder %s1484_s22, 0 }
  0x10   : > { %p59_p2 = scmp.ne.s32.totalorder %s1460_s16, %s1456_s15  ;;  %p1570_p3 = scmp.eq.s32.totalorder %s946_s23, 0 }
  0x11   : > { %p127_p4 = scmp.eq.s32.totalorder %s946_s23, 3  ;;  %p1574_p5 = por %p54_p1, %p53_p0 }
  0x12   : > { %p133_p6 = scmp.eq.s32.totalorder %s947_s24, 3  ;;  %p1580_p7 = por %p1570_p3, %p59_p2 }
  0x13   : > { %p1584_p8 = por %p127_p4, %p53_p0  ;;  %p948_p10 = scmp.ge.s32.totalorder %s1484_s22, 1 }
  0x14   : > { %s1863_s28 = scalar_select %p1580_p7, 1, 0 }
  0x15   : > { %s1864_s29 = scalar_select %p1584_p8, 1, 0 }
  0x16   : > { %p1588_p9 = por %p133_p6, %p59_p2  ;;  %p168_p11 = scmp.lt.s32.totalorder %s1484_s22, 5 }
  0x17   : > { %s1486_s6 = smov [#allocation5]   ;;  %p1193_p0 = scmp.lt.s32.totalorder %s1484_s22, 4 }
  0x18   : > { %s1865_s30 = scalar_select %p1588_p9, 1, 0 }
  0x19   : > { %p1594_p12 = pnand %p948_p10, %p168_p11  ;;  %s180_s7 = sshll.u32 %s1486_s6, 4  ;;  %s181_s7 = int_to_ptr.vmem [resolvable:$true] %s180_s7 }
  0x1a   : > { %1866 = sst [smem:[#allocation16_spill]] %s1865_s30  ;;  %p1609_p2 = pnand %p1193_p0, %p1574_p5 }
  0x1b   : > { %s1867_s5 = scalar_select %p1594_p12, 1, 0 }
  0x1c   : > { %p1177_p13 = pneg %p1594_p12  ;;  %s1311_s10 = scalar_lea.vmem %s181_s7, 2048 }
  0x1d   : > { %p1312_p6 = scmp.ne.s32.totalorder %s181_s7, %s1311_s10  ;;  %p1319_p9 = scmp.lt.s32.totalorder %s181_s7, %s181_s7 }
  0x1e   : > { %p1603_p1 = pnand %p1177_p13, %p1570_p3  ;;  %p1320_p8 = scmp.lt.s32.totalorder %s1311_s10, %s1311_s10 }
  0x20   : > { %p1302_p4 = pneg %p1603_p1  ;;  %p1321_p7 = por %p1320_p8, %p1319_p9 }
  0x22   : > { %p1314_p10 = pnand %p1312_p6, %p1302_p4 }
  0x24   : > { %p1315_p11 = pneg %p1314_p10 }
  0x26   : > { %p1322_p12 = pnand %p1321_p7, %p1315_p11 }
  0x28   : > { %1325 = shalt.err (!%p1322_p12)
}
  0x29   : > { %s1850_s11 = smov 128   ;;  %s1488_s12 = smov 8  }
  0x2a   : > { %s1870_s1 = sld [smem:[#allocation18_spill]]  ;;  %s34_s23 = sadd.s32 1, %s1476_s20 }
  0x2b   : > { %p35_p5 = scmp.ge.s32.totalorder %s34_s23, 2  ;;  %s37_s24 = sadd.s32 1, %s1480_s21 }
  0x2c   : > { %s197_s27 = sand.u32 1, %s1464_s17   ;;  %s952_s6 = sshll.u32 %s1480_s21, 5 }
  0x2d   : > { %s1892_s23 = smov (%p35_p5, %s34_s23), 0  ;;  %s1894_s24 = smov (!%p35_p5, %s37_s24), %s1480_s21 }
  0x2e   : > { %1871 = sst [smem:[#allocation17_spill]] %s1892_s23  ;;  %s42_s8 = ssub.s32 %s1476_s20, %s1892_s23 }
  0x2f   : > { %p39_p7 = scmp.ge.s32.totalorder %s1894_s24, 2  ;;  %s951_s10 = sshll.u32 %s197_s27, 6 }
  0x30   : > { %1180 = dma.hbm_to_vmem [thread:$0]  (!%p1603_p1), %s1870_s1, 2048, %s181_s7, [#allocation6], %s1850_s11, %s1850_s11, %s1488_s12  }
  0x31   : > { %s206_s25 = sadd.s32 %s1476_s20, %s952_s6  ;;  %s1896_s24 = smov (%p39_p7, %s1894_s24), 0 }
  0x32   : > { %s953_s7 = sshll.u32 %s206_s25, 6  ;;  %s201_s12 = scalar_lea.vmem [#allocation2], %s951_s10 }
  0x33   : > { %s209_s13 = sshll.u32 %s201_s12, 4  ;;  %s41_s14 = ssub.s32 %s1480_s21, %s1896_s24  ;;  %s210_s13 = int_to_ptr.vmem [resolvable:$true] %s209_s13 }
  0x34   : > { %s208_s30 = scalar_lea.hbm %s1842_s0, %s953_s7  ;;  %s43_s15 = sor.u32 %s42_s8, %s41_s14 }
  0x35   : > { %p44_p8 = scmp.eq.s32.totalorder %s43_s15, 0  ;;  %s1872_s22 = sadd.s32 1, %s1464_s17 }
  0x36   : > { %s198_s23 = scalar_lea.sflag [#allocation3], %s197_s27  ;;  %p1328_p9 = pneg %p1609_p2 }
  0x37   : > { %s1642_s3 = scalar_select %p44_p8, %s1464_s17, %s1872_s22  }
  0x38   : > { %s1339_s6 = scalar_lea.vmem %s210_s13, 1024  ;;  %s1489_s25 = smov [#allocation2]  }
  0x39   : > { %p1340_p12 = scmp.ne.s32.totalorder %s210_s13, %s1339_s6  ;;  %s1344_s10 = sshll.u32 %s1489_s25, 4  ;;  %s1345_s10 = int_to_ptr.vmem [resolvable:$false] %s1344_s10 }
  0x3a   : > { %s1346_s12 = scalar_lea.vmem %s1345_s10, 2048  ;;  %p1347_p1 = scmp.lt.s32.totalorder %s210_s13, %s1345_s10 }
  0x3b   : > { %p1342_p13 = pnand %p1340_p12, %p1328_p9  ;;  %p1348_p4 = scmp.lt.s32.totalorder %s1346_s12, %s1339_s6 }
  0x3d   : > { %p1343_p0 = pneg %p1342_p13  ;;  %p1349_p6 = por %p1348_p4, %p1347_p1 }
  0x3f   : > { %p1350_p10 = pnand %p1349_p6, %p1343_p0 }
  0x41   : > { %1353 = shalt.err (!%p1350_p10)
}
  0x42   : > { %s1490_s1 = smov 64   ;;  %s1491_s15 = smov 4  }
  0x43   : > { %s1873_s22 = smov 128   ;;  %p1874_p11 = scmp.ne.s32.totalorder %s1867_s5, 0 }
  0x44   : > { %1184 = dma.hbm_to_vmem [thread:$0]  (!%p1609_p2), %s208_s30, 1024, %s210_s13, %s198_s23, %s1873_s22, %s1490_s1, %s1491_s15  }
  0x45   : > { %221 = sbr.rel (%p1874_p11) target bundleno = 458 (0x1ca), region = 32  ;;  %s1652_s11 = sand.u32 (!%p1874_p11), 1, %s1460_s16  }
  0x46   : > { %s1655_s27 = sshll.u32 (!%p1874_p11), %s1652_s11, 6  ;;  %s224_s8 = scalar_lea.sflag (!%p1874_p11), [#allocation3], %s1652_s11 }
  0x47   : > { %s1659_s7 = scalar_lea.vmem (!%p1874_p11), [#allocation2], %s1655_s27  ;;  %p1875_p5 = scmp.ne.s32.totalorder (!%p1874_p11), %s1863_s28, 0 }
  0x4a   : > { %1439 = dma.done.wait (%p1875_p5), %s224_s8, 1024  }
  0x4b   : > { %1441 = vsyncadd (%p1875_p5), %s224_s8, 4294966272 }
  0x4c   : > { %1443 = dma.done.wait (%p1570_p3), [#allocation6], 2048  }
  0x4d   : > { %1445 = vsyncadd (%p1570_p3), [#allocation6], 4294965248  ;;  %v1492_v0 = vmov 0   ;;  %v1268_v1 = vld [vmem:[%s1659_s7] sm:$0xff]   ;;  %v1269_v2 = vld [vmem:[%s1659_s7 + $0x8] sm:$0xff]   ;;  %v298_v33 = vlaneseq  ;;  %s1698_s30 = scalar_lea.vmem [#allocation8], %s1655_s27 }
  0x4e   : > { %484 = vmatprep.mubr.bf16.mxu0 %v1492_v0  ;;  %524 = vmatprep.mubr.bf16.mxu1 %v1492_v0  ;;  %v1270_v3 = vld [vmem:[%s1659_s7 + $0x10] sm:$0xff]   ;;  %v1271_v6 = vld [vmem:[%s1659_s7 + $0x18] sm:$0xff]   ;;  %v1279_v7 = vld [vmem:[#allocation5 + $0x64] ss:$8 sps:$4 sm:$0xff]   ;;  %s1702_s5 = scalar_lea.vmem [#allocation7], %s1655_s27  ;;  %s1017_s9 = sshll.u32 %s1468_s18, 4 }
  0x4f   : > { %356 = vxpose.xlu0.c.b16.start [1/8] %v1268_v1, 128  ;;  %v1276_v4 = vld [vmem:[#allocation5 + $0x74] ss:$8 sps:$4 sm:$0xff]   ;;  %v1278_v5 = vld [vmem:[#allocation5 + $0x70] ss:$8 sps:$4 sm:$0xff]   ;;  %v1281_v8 = vld [vmem:[#allocation5 + $0x60] ss:$8 sps:$4 sm:$0xff]  }
  0x50   : > { %452 = vmatprep.subr.bf16.mxu0 %v1276_v4  ;;  %1151 = vmatprep.subr.bf16.mxu1 %v1276_v4  ;;  %v1282_v9 = vld [vmem:[#allocation5 + $0x54] ss:$8 sps:$4 sm:$0xff]   ;;  %v1272_v10 = vld [vmem:[%s1659_s7 + $0x20] sm:$0xff]   ;;  %v1284_v11 = vld [vmem:[#allocation5 + $0x50] ss:$8 sps:$4 sm:$0xff]   ;;  %v299_v34 = vshrl.u32 %v298_v33, 7 }
  0x51   : > { %453 = vmatpush1.bf16.msra.mxu0 %v1278_v5  ;;  %1159 = vmatpush1.bf16.msra.mxu1 %v1278_v5  ;;  %v1285_v12 = vld [vmem:[#allocation5 + $0x44] ss:$8 sps:$4 sm:$0xff]   ;;  %v1287_v14 = vld [vmem:[#allocation5 + $0x40] ss:$8 sps:$4 sm:$0xff]   ;;  %v1288_v15 = vld [vmem:[#allocation5 + $0x34] ss:$8 sps:$4 sm:$0xff]  }
  0x52   : > { %454 = vmatprep.subr.bf16.mxu0 %v1279_v7  ;;  %1152 = vmatprep.subr.bf16.mxu1 %v1279_v7  ;;  %v1273_v13 = vld [vmem:[%s1659_s7 + $0x28] sm:$0xff]   ;;  %v1274_v16 = vld [vmem:[%s1659_s7 + $0x30] sm:$0xff]   ;;  %v1275_v19 = vld [vmem:[%s1659_s7 + $0x38] sm:$0xff]   ;;  %v300_v35 = vsub.s32 0, %v299_v34  ;;  %v304_v38 = vsub.s32 1, %v299_v34  ;;  %s1018_s23 = sshll.u32 %s1472_s19, 5 }
  0x53   : > { %357 = vxpose.xlu0.c.b16.cont [2/8] %v1269_v2, 128  ;;  %v1290_v17 = vld [vmem:[#allocation5 + $0x30] ss:$8 sps:$4 sm:$0xff]   ;;  %v1291_v18 = vld [vmem:[#allocation5 + $0x24] ss:$8 sps:$4 sm:$0xff]   ;;  %v1293_v20 = vld [vmem:[#allocation5 + $0x20] ss:$8 sps:$4 sm:$0xff]   ;;  %s791_s14 = sadd.s32 %s1018_s23, %s1017_s9 }
  0x54   : > { %v1294_v21 = vld [vmem:[#allocation5 + $0x14] ss:$8 sps:$4 sm:$0xff]   ;;  %v1296_v22 = vld [vmem:[#allocation5 + $0x10] ss:$8 sps:$4 sm:$0xff]   ;;  %v1297_v23 = vld [vmem:[#allocation5 + $0x4] ss:$8 sps:$4 sm:$0xff]  }
  0x55   : > { %455 = vmatpush1.bf16.msra.mxu0 %v1281_v8  ;;  %1160 = vmatpush1.bf16.msra.mxu1 %v1281_v8  ;;  %v1299_v24 = vld [vmem:[#allocation5] ss:$8 sps:$4 sm:$0xff]   ;;  %s812_s13 = sshll.u32 %s1698_s30, 4  ;;  %s1019_s18 = sshll.u32 %s791_s14, 6  ;;  %s1745_s13 = int_to_ptr.vmem [resolvable:$true] %s812_s13 }
  0x56   : > { %456 = vmatprep.subr.bf16.mxu0 %v1282_v9  ;;  %1153 = vmatprep.subr.bf16.mxu1 %v1282_v9  ;;  %v296_v36 = vld [vmem:[%s1844_s2] sm:$0x3]  ;;  %s794_s19 = sshll.u32 %s1702_s5, 4  ;;  %s1753_s10 = scalar_lea.hbm %s1846_s4, %s1019_s18  ;;  %s1760_s19 = int_to_ptr.vmem [resolvable:$true] %s794_s19 }
  0x57   : > { %358 = vxpose.xlu0.c.b16.cont [3/8] %v1270_v3, 128  ;;  %v1688_v37 = vrot.slane %v296_v36, %v300_v35  ;;  %v1691_v42 = vrot.slane %v296_v36, %v304_v38  ;;  %s1876_s15 = sld [smem:[#allocation19_spill]]  ;;  %s779_s8 = scalar_lea.sflag [#allocation9], %s1652_s11 }
  0x58   : > { %s1354_s7 = scalar_lea.vmem %s1745_s13, 1024  ;;  %p1878_p2 = scmp.ne.s32.totalorder %s1864_s29, 0 }
  0x59   : > { %457 = vmatpush1.bf16.msra.mxu0 %v1284_v11  ;;  %1161 = vmatpush1.bf16.msra.mxu1 %v1284_v11  ;;  %p1355_p3 = scmp.ne.s32.totalorder %s1745_s13, %s1354_s7  ;;  %s1493_s26 = smov [#allocation8]  }
  0x5a   : > { %458 = vmatprep.subr.bf16.mxu0 %v1285_v12  ;;  %1154 = vmatprep.subr.bf16.mxu1 %v1285_v12  ;;  %s1358_s28 = sshll.u32 %s1493_s26, 4  ;;  %s1359_s28 = int_to_ptr.vmem [resolvable:$false] %s1358_s28 }
  0x5b   : > { %359 = vxpose.xlu0.c.b16.cont [4/8] %v1271_v6, 128  ;;  %p1356_p7 = pnand %p1355_p3, %p1878_p2  ;;  %s1360_s9 = scalar_lea.vmem %s1359_s28, 2048 }
  0x5c   : > { %p1361_p9 = scmp.lt.s32.totalorder %s1745_s13, %s1359_s28  ;;  %p1362_p12 = scmp.lt.s32.totalorder %s1360_s9, %s1354_s7 }
  0x5d   : > { %459 = vmatpush1.bf16.msra.mxu0 %v1287_v14  ;;  %1162 = vmatpush1.bf16.msra.mxu1 %v1287_v14  ;;  %s1877_s27 = smov %s1876_s15  ;;  %s1758_s22 = scalar_lea.hbm %s1876_s15, %s1019_s18 }
  0x5e   : > { %460 = vmatprep.subr.bf16.mxu0 %v1288_v15  ;;  %1155 = vmatprep.subr.bf16.mxu1 %v1288_v15  ;;  %p1357_p8 = pneg %p1356_p7  ;;  %p1363_p13 = por %p1362_p12, %p1361_p9 }
  0x5f   : > { %360 = vxpose.xlu0.c.b16.cont [5/8] %v1272_v10, 128 }
  0x60   : > { %p1364_p0 = pnand %p1363_p13, %p1357_p8 }
  0x61   : > { %461 = vmatpush1.bf16.msra.mxu0 %v1290_v17  ;;  %1163 = vmatpush1.bf16.msra.mxu1 %v1290_v17 }
  0x62   : > { %462 = vmatprep.subr.bf16.mxu0 %v1291_v18  ;;  %1156 = vmatprep.subr.bf16.mxu1 %v1291_v18 }
  0x63   : > { %361 = vxpose.xlu0.c.b16.cont [6/8] %v1273_v13, 128 }
  0x65   : > { %463 = vmatpush1.bf16.msra.mxu0 %v1293_v20  ;;  %1164 = vmatpush1.bf16.msra.mxu1 %v1293_v20 }
  0x66   : > { %464 = vmatprep.subr.bf16.mxu0 %v1294_v21  ;;  %1157 = vmatprep.subr.bf16.mxu1 %v1294_v21 }
  0x67   : > { %362 = vxpose.xlu0.c.b16.cont [7/8] %v1274_v16, 128 }
  0x69   : > { %465 = vmatpush1.bf16.msra.mxu0 %v1296_v22  ;;  %1165 = vmatpush1.bf16.msra.mxu1 %v1296_v22 }
  0x6a   : > { %466 = vmatprep.subr.bf16.mxu0 %v1297_v23  ;;  %1158 = vmatprep.subr.bf16.mxu1 %v1297_v23 }
  0x6b   : > { %363 = vxpose.xlu0.c.b16.end [8/8] %v1275_v19, 128 }
  0x6d   : > { %467 = vmatpush1.bf16.msra.mxu0 %v1299_v24  ;;  %1166 = vmatpush1.bf16.msra.mxu1 %v1299_v24 }
  0xb1   : > { %v364_v25 = vpop.trf.xlu0 }
  0xb2   : > { %485 = vmatmul.mubr.bf16.vlgmr.msra.gmra.mxu0 %v364_v25 }
  0xb3   : > { %494 = vmatprep.mubr.bf16.mxu0 %v1492_v0 }
  0xb5   : > { %v365_v26 = vpop.trf.xlu0 }
  0xb9   : > { %v366_v27 = vpop.trf.xlu0 }
  0xba   : > { %495 = vmatmul.mubr.bf16.gmra.mxu0 %v365_v26 }
  0xbb   : > { %504 = vmatprep.mubr.bf16.mxu0 %v1492_v0 }
  0xbd   : > { %v367_v28 = vpop.trf.xlu0 }
  0xc1   : > { %v368_v29 = vpop.trf.xlu0 }
  0xc2   : > { %505 = vmatmul.mubr.bf16.gmra.mxu0 %v366_v27  ;;  %525 = vmatmul.mubr.bf16.vlgmr.msra.gmra.mxu1 %v368_v29 }
  0xc3   : > { %514 = vmatprep.mubr.bf16.mxu0 %v1492_v0  ;;  %534 = vmatprep.mubr.bf16.mxu1 %v1492_v0 }
  0xc5   : > { %v369_v30 = vpop.trf.xlu0 }
  0xc9   : > { %v370_v31 = vpop.trf.xlu0 }
  0xca   : > { %515 = vmatmul.mubr.bf16.gmra.mxu0 %v367_v28  ;;  %535 = vmatmul.mubr.bf16.gmra.mxu1 %v369_v30 }
  0xcb   : > { %544 = vmatprep.mubr.bf16.mxu1 %v1492_v0 }
  0xcd   : > { %v371_v32 = vpop.trf.xlu0 }
  0xd2   : > { %545 = vmatmul.mubr.bf16.gmra.mxu1 %v370_v31 }
  0xd3   : > { %554 = vmatprep.mubr.bf16.mxu1 %v1492_v0 }
  0xda   : > { %555 = vmatmul.mubr.bf16.gmra.mxu1 %v371_v32 }
 0x172   : > { %v486_v39 = vpop.f32.mrf.mxu0 }
 0x173   : > { %v487_v40 = vadd.f32 %v486_v39, %v1688_v37 }
 0x174   : > { %v488_v41 = vpop.f32.mrf.mxu0 }
 0x175   : > { %v581_v44 = vmul.f32 0.01, %v487_v40  ;;  %vm565_vm0 = vcmp.ge.f32.partialorder %v487_v40, 0.0  ;;  %v489_v47 = vadd.f32 %v488_v41, %v1691_v42 }
 0x176   : > { %v490_v43 = vpop.f32.mrf.mxu0 }
 0x177   : > { %v491_v45 = vadd.f32 %v490_v43, %v1688_v37  ;;  %v597_v51 = vsel %vm565_vm0, %v487_v40, %v581_v44 }
 0x178   : > { %v492_v46 = vpop.f32.mrf.mxu0 }
 0x179   : > { %vm566_vm1 = vcmp.ge.f32.partialorder %v491_v45, 0.0  ;;  %v582_v48 = vmul.f32 0.01, %v491_v45  ;;  %v493_v49 = vadd.f32 %v492_v46, %v1691_v42 }
 0x17a   : > { %v496_v50 = vpop.f32.mrf.mxu0 }
 0x17b   : > { %v598_v52 = vsel %vm566_vm1, %v491_v45, %v582_v48  ;;  %v1100_v53 = vpack.c.bf16 %v493_v49, %v489_v47  ;;  %v497_v54 = vadd.f32 %v496_v50, %v1688_v37 }
 0x17c   : > { %v1060_v55 = vpack.c.bf16 %v598_v52, %v597_v51  ;;  %v498_v56 = vpop.f32.mrf.mxu0 }
 0x17d   : > { %1101 = vst [vmem:[%s1698_s30] sm:$0xff] %v1100_v53   ;;  %v583_v57 = vmul.f32 0.01, %v497_v54  ;;  %vm567_vm2 = vcmp.ge.f32.partialorder %v497_v54, 0.0  ;;  %v499_v61 = vadd.f32 %v498_v56, %v1691_v42 }
 0x17e   : > { %1061 = vst [vmem:[%s1702_s5] sm:$0xff] %v1060_v55   ;;  %v500_v58 = vpop.f32.mrf.mxu0 }
 0x17f   : > { %v501_v59 = vadd.f32 %v500_v58, %v1688_v37  ;;  %v599_v0 = vsel %vm567_vm2, %v497_v54, %v583_v57 }
 0x180   : > { %v502_v60 = vpop.f32.mrf.mxu0 }
 0x181   : > { %vm568_vm3 = vcmp.ge.f32.partialorder %v501_v59, 0.0  ;;  %v584_v62 = vmul.f32 0.01, %v501_v59  ;;  %v503_v63 = vadd.f32 %v502_v60, %v1691_v42 }
 0x182   : > { %v506_v1 = vpop.f32.mrf.mxu0  ;;  %v526_v2 = vpop.f32.mrf.mxu1 }
 0x183   : > { %v600_v3 = vsel %vm568_vm3, %v501_v59, %v584_v62  ;;  %v1105_v4 = vpack.c.bf16 %v503_v63, %v499_v61  ;;  %v507_v5 = vadd.f32 %v506_v1, %v1688_v37  ;;  %v527_v6 = vadd.f32 %v526_v2, %v1688_v37 }
 0x184   : > { %v1065_v7 = vpack.c.bf16 %v600_v3, %v599_v0  ;;  %v508_v8 = vpop.f32.mrf.mxu0  ;;  %v528_v9 = vpop.f32.mrf.mxu1 }
 0x185   : > { %1144 = vst [vmem:[%s1698_s30 + $0x8] sm:$0xff] %v1105_v4   ;;  %v585_v10 = vmul.f32 0.01, %v507_v5  ;;  %v589_v11 = vmul.f32 0.01, %v527_v6  ;;  %vm569_vm4 = vcmp.ge.f32.partialorder %v507_v5, 0.0  ;;  %v509_v16 = vadd.f32 %v508_v8, %v1691_v42 }
 0x186   : > { %1137 = vst [vmem:[%s1702_s5 + $0x8] sm:$0xff] %v1065_v7   ;;  %v510_v12 = vpop.f32.mrf.mxu0  ;;  %v530_v13 = vpop.f32.mrf.mxu1  ;;  %vm573_vm5 = vcmp.ge.f32.partialorder %v527_v6, 0.0  ;;  %v529_v17 = vadd.f32 %v528_v9, %v1691_v42 }
 0x187   : > { %v511_v14 = vadd.f32 %v510_v12, %v1688_v37  ;;  %v531_v15 = vadd.f32 %v530_v13, %v1688_v37  ;;  %v601_v22 = vsel %vm569_vm4, %v507_v5, %v585_v10  ;;  %v605_v23 = vsel %vm573_vm5, %v527_v6, %v589_v11 }
 0x188   : > { %v512_v18 = vpop.f32.mrf.mxu0  ;;  %v532_v19 = vpop.f32.mrf.mxu1 }
 0x189   : > { %vm570_vm6 = vcmp.ge.f32.partialorder %v511_v14, 0.0  ;;  %v586_v20 = vmul.f32 0.01, %v511_v14  ;;  %vm574_vm7 = vcmp.ge.f32.partialorder %v531_v15, 0.0  ;;  %v590_v21 = vmul.f32 0.01, %v531_v15 }
 0x18a   : > { %v513_v24 = vadd.f32 %v512_v18, %v1691_v42  ;;  %v533_v25 = vadd.f32 %v532_v19, %v1691_v42  ;;  %v516_v26 = vpop.f32.mrf.mxu0  ;;  %v536_v27 = vpop.f32.mrf.mxu1 }
 0x18b   : > { %v602_v28 = vsel %vm570_vm6, %v511_v14, %v586_v20  ;;  %v606_v29 = vsel %vm574_vm7, %v531_v15, %v590_v21  ;;  %v517_v30 = vadd.f32 %v516_v26, %v1688_v37  ;;  %v537_v31 = vadd.f32 %v536_v27, %v1688_v37 }
 0x18c   : > { %v1070_v32 = vpack.c.bf16 %v602_v28, %v601_v22  ;;  %v1080_v33 = vpack.c.bf16 %v606_v29, %v605_v23  ;;  %v1110_v34 = vpack.c.bf16 %v513_v24, %v509_v16  ;;  %v1120_v35 = vpack.c.bf16 %v533_v25, %v529_v17  ;;  %v518_v36 = vpop.f32.mrf.mxu0  ;;  %v538_v38 = vpop.f32.mrf.mxu1 }
 0x18d   : > { %v587_v39 = vmul.f32 0.01, %v517_v30  ;;  %vm571_vm8 = vcmp.ge.f32.partialorder %v517_v30, 0.0  ;;  %v591_v43 = vmul.f32 0.01, %v537_v31  ;;  %vm575_vm9 = vcmp.ge.f32.partialorder %v537_v31, 0.0 }
 0x18e   : > { %1138 = vst [vmem:[%s1702_s5 + $0x10] sm:$0xff] %v1070_v32   ;;  %1140 = vst [vmem:[%s1702_s5 + $0x20] sm:$0xff] %v1080_v33   ;;  %v520_v40 = vpop.f32.mrf.mxu0  ;;  %v540_v41 = vpop.f32.mrf.mxu1  ;;  %v519_v46 = vadd.f32 %v518_v36, %v1691_v42  ;;  %v539_v52 = vadd.f32 %v538_v38, %v1691_v42 }
 0x18f   : > { %1145 = vst [vmem:[%s1698_s30 + $0x10] sm:$0xff] %v1110_v34   ;;  %1147 = vst [vmem:[%s1698_s30 + $0x20] sm:$0xff] %v1120_v35   ;;  %v521_v44 = vadd.f32 %v520_v40, %v1688_v37  ;;  %v541_v45 = vadd.f32 %v540_v41, %v1688_v37  ;;  %v603_v51 = vsel %vm571_vm8, %v517_v30, %v587_v39 }
 0x190   : > { %v522_v47 = vpop.f32.mrf.mxu0  ;;  %v542_v48 = vpop.f32.mrf.mxu1  ;;  %v607_v56 = vsel %vm575_vm9, %v537_v31, %v591_v43 }
 0x191   : > { %vm572_vm10 = vcmp.ge.f32.partialorder %v521_v44, 0.0  ;;  %v588_v49 = vmul.f32 0.01, %v521_v44  ;;  %vm576_vm11 = vcmp.ge.f32.partialorder %v541_v45, 0.0  ;;  %v592_v50 = vmul.f32 0.01, %v541_v45 }
 0x192   : > { %v523_v53 = vadd.f32 %v522_v47, %v1691_v42  ;;  %v543_v54 = vadd.f32 %v542_v48, %v1691_v42  ;;  %v546_v55 = vpop.f32.mrf.mxu1 }
 0x193   : > { %v604_v57 = vsel %vm572_vm10, %v521_v44, %v588_v49  ;;  %v608_v58 = vsel %vm576_vm11, %v541_v45, %v592_v50  ;;  %v547_v59 = vadd.f32 %v546_v55, %v1688_v37 }
 0x194   : > { %v1075_v60 = vpack.c.bf16 %v604_v57, %v603_v51  ;;  %v1085_v61 = vpack.c.bf16 %v608_v58, %v607_v56  ;;  %v1115_v62 = vpack.c.bf16 %v523_v53, %v519_v46  ;;  %v1125_v63 = vpack.c.bf16 %v543_v54, %v539_v52  ;;  %v548_v0 = vpop.f32.mrf.mxu1 }
 0x195   : > { %v593_v2 = vmul.f32 0.01, %v547_v59  ;;  %vm577_vm12 = vcmp.ge.f32.partialorder %v547_v59, 0.0  ;;  %v549_v5 = vadd.f32 %v548_v0, %v1691_v42 }
 0x196   : > { %1139 = vst [vmem:[%s1702_s5 + $0x18] sm:$0xff] %v1075_v60   ;;  %1141 = vst [vmem:[%s1702_s5 + $0x28] sm:$0xff] %v1085_v61   ;;  %v550_v1 = vpop.f32.mrf.mxu1 }
 0x197   : > { %1146 = vst [vmem:[%s1698_s30 + $0x18] sm:$0xff] %v1115_v62   ;;  %1148 = vst [vmem:[%s1698_s30 + $0x28] sm:$0xff] %v1125_v63   ;;  %v551_v3 = vadd.f32 %v550_v1, %v1688_v37  ;;  %v609_v9 = vsel %vm577_vm12, %v547_v59, %v593_v2 }
 0x198   : > { %v552_v4 = vpop.f32.mrf.mxu1 }
 0x199   : > { %vm578_vm13 = vcmp.ge.f32.partialorder %v551_v3, 0.0  ;;  %v594_v6 = vmul.f32 0.01, %v551_v3  ;;  %v553_v7 = vadd.f32 %v552_v4, %v1691_v42 }
 0x19a   : > { %v556_v8 = vpop.f32.mrf.mxu1 }
 0x19b   : > { %v610_v10 = vsel %vm578_vm13, %v551_v3, %v594_v6  ;;  %v1130_v11 = vpack.c.bf16 %v553_v7, %v549_v5  ;;  %v557_v12 = vadd.f32 %v556_v8, %v1688_v37 }
 0x19c   : > { %v1090_v13 = vpack.c.bf16 %v610_v10, %v609_v9  ;;  %v558_v14 = vpop.f32.mrf.mxu1 }
 0x19d   : > { %1149 = vst [vmem:[%s1698_s30 + $0x30] sm:$0xff] %v1130_v11   ;;  %v595_v16 = vmul.f32 0.01, %v557_v12  ;;  %vm579_vm14 = vcmp.ge.f32.partialorder %v557_v12, 0.0  ;;  %v559_v19 = vadd.f32 %v558_v14, %v1691_v42 }
 0x19e   : > { %1142 = vst [vmem:[%s1702_s5 + $0x30] sm:$0xff] %v1090_v13   ;;  %v560_v15 = vpop.f32.mrf.mxu1 }
 0x19f   : > { %v561_v17 = vadd.f32 %v560_v15, %v1688_v37  ;;  %v611_v22 = vsel %vm579_vm14, %v557_v12, %v595_v16 }
 0x1a0   : > { %v562_v18 = vpop.f32.mrf.mxu1 }
 0x1a1   : > { %vm580_vm15 = vcmp.ge.f32.partialorder %v561_v17, 0.0  ;;  %v596_v20 = vmul.f32 0.01, %v561_v17  ;;  %v563_v21 = vadd.f32 %v562_v18, %v1691_v42 }
 0x1a3   : > { %v612_v37 = vsel %vm580_vm15, %v561_v17, %v596_v20  ;;  %v1135_v23 = vpack.c.bf16 %v563_v21, %v559_v19 }
 0x1a4   : > { %v1095_v24 = vpack.c.bf16 %v612_v37, %v611_v22 }
 0x1a5   : > { %1150 = vst [vmem:[%s1698_s30 + $0x38] sm:$0xff] %v1135_v23  }
 0x1a6   : > { %1143 = vst [vmem:[%s1702_s5 + $0x38] sm:$0xff] %v1095_v24  }
 0x1a7   : > { %1367 = shalt.err (!%p1364_p0)
}
 0x1a8   : > { %s1368_s30 = scalar_lea.hbm %s1753_s10, 1024  ;;  %s1372_s14 = scalar_lea.hbm %s1846_s4, 4096 }
 0x1a9   : > { %p1369_p1 = scmp.ne.s32.totalorder %s1753_s10, %s1368_s30  ;;  %p1373_p10 = scmp.lt.s32.totalorder %s1753_s10, %s1846_s4 }
 0x1aa   : > { %p1374_p11 = scmp.lt.s32.totalorder %s1372_s14, %s1368_s30 }
 0x1ab   : > { %p1370_p4 = pnand %p1369_p1, %p1878_p2 }
 0x1ac   : > { %p1375_p5 = por %p1374_p11, %p1373_p10 }
 0x1ad   : > { %p1371_p6 = pneg %p1370_p4 }
 0x1af   : > { %p1376_p3 = pnand %p1375_p5, %p1371_p6 }
 0x1b1   : > { %1379 = shalt.err (!%p1376_p3)
}
 0x1b2   : > { %s1494_s25 = smov 64   ;;  %s1495_s12 = smov 4  }
 0x1b3   : > { %1174 = dma.vmem_to_hbm [thread:$0]  (%p1878_p2), %s1745_s13, 1024, %s1753_s10, %s779_s8, %s1494_s25, %s1494_s25, %s1495_s12  }
 0x1b4   : > { %s774_s1 = scalar_lea.sflag [#allocation4], %s1652_s11  ;;  %s1380_s15 = scalar_lea.vmem %s1760_s19, 1024 }
 0x1b5   : > { %p1381_p7 = scmp.ne.s32.totalorder %s1760_s19, %s1380_s15  ;;  %s1496_s7 = smov [#allocation7]  }
 0x1b6   : > { %s1384_s26 = sshll.u32 %s1496_s7, 4  ;;  %s1385_s26 = int_to_ptr.vmem [resolvable:$false] %s1384_s26 }
 0x1b7   : > { %p1382_p8 = pnand %p1381_p7, %p1878_p2  ;;  %s1386_s28 = scalar_lea.vmem %s1385_s26, 2048 }
 0x1b8   : > { %p1387_p12 = scmp.lt.s32.totalorder %s1760_s19, %s1385_s26  ;;  %p1388_p13 = scmp.lt.s32.totalorder %s1386_s28, %s1380_s15 }
 0x1b9   : > { %p1383_p9 = pneg %p1382_p8 }
 0x1ba   : > { %p1389_p0 = por %p1388_p13, %p1387_p12 }
 0x1bc   : > { %p1390_p1 = pnand %p1389_p0, %p1383_p9 }
 0x1be   : > { %1393 = shalt.err (!%p1390_p1)
}
 0x1bf   : > { %s1394_s13 = scalar_lea.hbm %s1758_s22, 1024  ;;  %s1398_s8 = scalar_lea.hbm %s1877_s27, 4096 }
 0x1c0   : > { %p1395_p4 = scmp.ne.s32.totalorder %s1758_s22, %s1394_s13  ;;  %p1399_p11 = scmp.lt.s32.totalorder %s1758_s22, %s1877_s27 }
 0x1c1   : > { %p1400_p5 = scmp.lt.s32.totalorder %s1398_s8, %s1394_s13 }
 0x1c2   : > { %p1396_p6 = pnand %p1395_p4, %p1878_p2 }
 0x1c3   : > { %p1401_p3 = por %p1400_p5, %p1399_p11 }
 0x1c4   : > { %p1397_p10 = pneg %p1396_p6 }
 0x1c6   : > { %p1402_p7 = pnand %p1401_p3, %p1397_p10 }
 0x1c8   : > { %1405 = shalt.err (!%p1402_p7)
}
 0x1c9   : > { %1173 = dma.vmem_to_hbm [thread:$0]  (%p1878_p2), %s1760_s19, 1024, %s1758_s22, %s774_s1, %s1494_s25, %s1494_s25, %s1495_s12  }
 0x1ca PF: > { %s1879_s5 = sld [smem:[#allocation15_spill]] }
 0x1cb   : > { %s1880_s23 = sld [smem:[#allocation14_spill]] }
 0x1cc   : > { %s1881_s14 = sld [smem:[#allocation16_spill]] }
 0x1d0   : > { %p1195_p8 = scmp.ge.s32.totalorder %s1879_s5, 2 }
 0x1d1   : > { %s827_s18 = sand.u32 1, %s1880_s23  }
 0x1d2   : > { %p1882_p9 = scmp.ne.s32.totalorder %s1881_s14, 0  ;;  %s828_s6 = scalar_lea.sflag [#allocation4], %s827_s18 }
 0x1d4   : > { %p1186_p12 = pnand %p1195_p8, %p1882_p9 }
 0x1d6   : > { %p1187_p13 = pneg %p1186_p12 }
 0x1d8   : > { %1447 = dma.done.wait (%p1187_p13), %s828_s6, 1024  }
 0x1d9   : > { %1449 = vsyncadd (%p1187_p13), %s828_s6, 4294966272  ;;  %s837_s15 = scalar_lea.sflag [#allocation9], %s827_s18 }
 0x1da   : > { %1451 = dma.done.wait (%p1187_p13), %s837_s15, 1024  }
 0x1db   : > { %1453 = vsyncadd (%p1187_p13), %s837_s15, 4294966272  ;;  %s25_s22 = sadd.s32 1, %s1879_s5   ;;  %s1883_s29 = sld [smem:[#allocation17_spill]] }
 0x1dc   : > { %p22_p0 = scmp.ge.s32.totalorder %s25_s22, 6   ;;  %s1884_s15 = smov %s1460_s16 }
 0x1dd   : > { %s1885_s16 = smov %s1464_s17  ;;  %s1886_s17 = smov %s1642_s3 }
 0x1de   : > { %s1887_s18 = smov %s1476_s20  ;;  %s1888_s19 = smov %s1480_s21 }
 0x1df   : > { %s1890_s21 = smov %s1896_s24  ;;  %24 = sbr.rel (!%p22_p0) target bundleno = 13 (0xd), region = 98 }
 0x1e1   : > { %s1889_s20 = smov %s1883_s29 }
 0x1e4   :  { %842 = vsyncpa [#allocation3], 1 }
 0x1e5   :  { %844 = vsyncpa [#allocation3 + $0x1], 1 }
 0x1e6   :  { %845 = vsyncpa [#allocation6], 1 }
 0x1e7   :  { %846 = vsyncpa [#allocation4], 1 }
 0x1e8   :  { %848 = vsyncpa [#allocation4 + $0x1], 1 }
 0x1e9   :  { %849 = vsyncpa [#allocation9], 1 }
 0x1ea   :  { %851 = vsyncpa [#allocation9 + $0x1], 1 }

</bundles_post_ra>
